<compile_context>
chip_gen: v7x
topology: tpu7x:2x2x1
jax: 0.10.0
libtpu: 0.0.40
codegen_flags: <defaults>
</compile_context>

<pallas_src>
import functools

import jax
import jax.numpy as jnp
from jax import lax
from jax.experimental import pallas as pl
from jax.experimental.pallas import tpu as pltpu


def _ceil_div(a, b):
    return -(-a // b)


def _round_up(a, b):
    return _ceil_div(a, b) * b


def _myloss_kernel(x_ref, y_ref, seg_ref, o_ref, *, rows, tm, need_mask):
    """One grid step: a (tm, cols) lane-packed tile -> one partial scalar.

    x_ref, y_ref : (tm, cols) VMEM tiles; each packed row holds k original
                   rows, each padded to dp contiguous lanes (k * dp = cols).
    seg_ref      : (cols, k) constant 0/1 segment-sum matrix
                   (seg[l, s] = 1  iff  l // dp == s).
    o_ref        : (1, 8, 128) lane-dense block; the tile's partial loss is
                   broadcast into it (unmasked store).  The wrapper reads
                   element [i, 0, 0] per tile and sums.
    """
    diff = x_ref[...].astype(jnp.float32) - y_ref[...].astype(jnp.float32)
    sq = diff * diff

    if need_mask:
        # Last tile may run past the real row count; zero those rows so they
        # contribute sqrt(0) = 0 (OOB reads are undefined, possibly garbage).
        i = pl.program_id(0)
        valid = rows - i * tm
        row_ids = lax.broadcasted_iota(jnp.int32, sq.shape, 0)
        sq = jnp.where(row_ids < valid, sq, 0.0)

    # Segmented per-(original-)row reduction on the MXU: (tm, cols) @ (cols, k)
    row_sq = jnp.dot(sq, seg_ref[...], preferred_element_type=jnp.float32)
    partial = jnp.sum(jnp.sqrt(row_sq), axis=(0, 1), keepdims=True)  # (1, 1)
    o_ref[...] = jnp.broadcast_to(partial, o_ref.shape)


def myloss_pallas(org_y_prob, modified_y, *,
                  block_bytes=4 * 1024 * 1024, max_tile_rows=8192):
    """sum_i ||org_y_prob[i] - modified_y[i]||_2 via a Pallas TPU kernel."""
    assert org_y_prob.shape == modified_y.shape
    assert org_y_prob.ndim == 2
    x, y = org_y_prob, modified_y
    n, d = x.shape

    # ---- lane packing: fold k rows (each padded to dp lanes) into 128 lanes.
    if d >= 128:
        dp, k = d, 1                      # wide rows: one row per packed row
    else:
        dp = 1
        while dp < d:
            dp *= 2                       # next power of two >= d (divides 128)
        k = 128 // dp
    cols = k * dp

    # ---- pad ONLY the < k-row packing remainder and the per-row lane pad.
    n_pack = _round_up(n, k)
    if n_pack != n or dp != d:
        x = jnp.pad(x, ((0, n_pack - n), (0, dp - d)))
        y = jnp.pad(y, ((0, n_pack - n), (0, dp - d)))
    rows = n_pack // k
    x = x.reshape(rows, cols)             # free bitcast when no pad was needed
    y = y.reshape(rows, cols)

    # ---- tile selection: big blocks, sublane-aligned, >= 2 tiles when possible.
    itemsize = jnp.dtype(x.dtype).itemsize
    sublane = {1: 32, 2: 16, 4: 8}.get(itemsize, 8)
    if rows <= sublane:
        tm = rows                         # single tile == full array dims
    else:
        cap = min(max_tile_rows, max(sublane, block_bytes // (cols * itemsize)))
        cap = max(sublane, (cap // sublane) * sublane)
        half = _round_up(_ceil_div(rows, 2), sublane)   # keep >= 2 grid steps
        tm = min(cap, half)
    grid_n = _ceil_div(rows, tm)
    need_mask = (rows % tm) != 0
    # TODO(synk): for extremely wide rows (D*4 bytes > block budget) tile D as
    # a trailing "arbitrary" grid axis with a (tm, 1) accumulator.

    # Constant segment-sum matrix: seg[l, s] = 1 iff lane l belongs to row s.
    lane = jnp.arange(cols, dtype=jnp.int32)
    seg_mat = (lane[:, None] // dp ==
               jnp.arange(k, dtype=jnp.int32)[None, :]).astype(jnp.float32)

    kernel = functools.partial(_myloss_kernel, rows=rows, tm=tm,
                               need_mask=need_mask)

    partials = pl.pallas_call(
        kernel,
        out_shape=jax.ShapeDtypeStruct((grid_n, 8, 128), jnp.float32),
        grid_spec=pltpu.PrefetchScalarGridSpec(
            num_scalar_prefetch=0,
            grid=(grid_n,),
            in_specs=[
                pl.BlockSpec((tm, cols), lambda i: (i, 0)),
                pl.BlockSpec((tm, cols), lambda i: (i, 0)),
                pl.BlockSpec((cols, k), lambda i: (0, 0)),   # resident constant
            ],
            # each grid step owns its own lane-dense (8,128)-aligned block, so
            # the row axis can be split across TensorCores on v7x.
            out_specs=pl.BlockSpec((1, 8, 128), lambda i: (i, 0, 0)),
        ),
        compiler_params=pltpu.CompilerParams(
            dimension_semantics=("parallel",),
            vmem_limit_bytes=32 * 1024 * 1024,
        ),
    )(x, y, seg_mat)

    # tiny final reduction over per-tile partials (grid_n values).
    return jnp.sum(partials[:, 0, 0])


def myloss_ref(org_y_prob, modified_y):
    diff = org_y_prob.astype(jnp.float32) - modified_y.astype(jnp.float32)
    return jnp.sum(jnp.sqrt(jnp.sum(diff * diff, axis=-1)))


if __name__ == "__main__":
    key = jax.random.PRNGKey(0)
    k1, k2 = jax.random.split(key)

    # Small shapes consistent with the module: N rows of probability vectors.
    N, D = 16, 32
    org_y_prob_list = jax.nn.softmax(
        jax.random.normal(k1, (N, D), dtype=jnp.float32), axis=-1)
    modified_y_list = jax.nn.softmax(
        jax.random.normal(k2, (N, D), dtype=jnp.float32), axis=-1)

    loss = jax.block_until_ready(myloss_pallas(org_y_prob_list, modified_y_list))
    ref = myloss_ref(org_y_prob_list, modified_y_list)
    assert jnp.allclose(loss, ref, rtol=1e-5, atol=1e-5), (loss, ref)

    # ragged / multi-tile path (packing remainder pad + in-kernel tile mask)
    N2, D2 = 50, 32
    a = jax.nn.softmax(jax.random.normal(k1, (N2, D2), jnp.float32), axis=-1)
    b = jax.nn.softmax(jax.random.normal(k2, (N2, D2), jnp.float32), axis=-1)
    loss2 = jax.block_until_ready(myloss_pallas(a, b))
    ref2 = myloss_ref(a, b)
    assert jnp.allclose(loss2, ref2, rtol=1e-5, atol=1e-5), (loss2, ref2)

    # D that does not divide 128 (lane pad 10 -> 16, k = 8)
    N3, D3 = 33, 10
    a3 = jax.nn.softmax(jax.random.normal(k1, (N3, D3), jnp.float32), axis=-1)
    b3 = jax.nn.softmax(jax.random.normal(k2, (N3, D3), jnp.float32), axis=-1)
    loss3 = jax.block_until_ready(myloss_pallas(a3, b3))
    ref3 = myloss_ref(a3, b3)
    assert jnp.allclose(loss3, ref3, rtol=1e-5, atol=1e-5), (loss3, ref3)

    print("KERNEL_OK")
</pallas_src>

<mosaic_0001>
module attributes {stable_mosaic.version = 11 : i64} {
  func.func @_myloss_kernel(%arg0: i32, %arg1: memref<4x128xf32, #tpu.memory_space<vmem>>, %arg2: memref<4x128xf32, #tpu.memory_space<vmem>>, %arg3: memref<128x4xf32, #tpu.memory_space<vmem>>, %arg4: memref<1x8x128xf32, #tpu.memory_space<vmem>>) attributes {dimension_semantics = [#tpu.dimension_semantics<parallel>], iteration_bounds = array<i64: 1>, scalar_prefetch = 0 : i64, scratch_operands = 0 : i64, tpu.core_type = #tpu.core_type<tc>, window_params = [{transform_indices = @transform_0, window_bounds = array<i64: 4, 128>}, {transform_indices = @transform_1, window_bounds = array<i64: 4, 128>}, {pipeline_mode = #tpu.pipeline_mode<synchronous>, transform_indices = @transform_2, window_bounds = array<i64: 128, 4>}, {transform_indices = @transform_3, window_bounds = array<i64: 1, 8, 128>}]} {
    %c0 = arith.constant 0 : index
    %c0_0 = arith.constant 0 : index
    %0 = vector.load %arg1[%c0, %c0_0] : memref<4x128xf32, #tpu.memory_space<vmem>>, vector<4x128xf32>
    %c0_1 = arith.constant 0 : index
    %c0_2 = arith.constant 0 : index
    %1 = vector.load %arg2[%c0_1, %c0_2] : memref<4x128xf32, #tpu.memory_space<vmem>>, vector<4x128xf32>
    %2 = arith.subf %0, %1 : vector<4x128xf32>
    %3 = arith.mulf %2, %2 : vector<4x128xf32>
    %c0_3 = arith.constant 0 : index
    %c0_4 = arith.constant 0 : index
    %4 = vector.load %arg3[%c0_3, %c0_4] : memref<128x4xf32, #tpu.memory_space<vmem>>, vector<128x4xf32>
    %cst = arith.constant dense<0.000000e+00> : vector<4x4xf32>
    %5 = tpu.matmul %3, %4, %cst {dimension_numbers = #tpu.dot_dimension_numbers<[1], [0], [0], [1], [0, 0, 1, 1], [], []>} : vector<4x128xf32>, vector<128x4xf32>, vector<4x4xf32> -> vector<4x4xf32>
    %6 = math.sqrt %5 : vector<4x4xf32>
    %7 = vector.shape_cast %6 : vector<4x4xf32> to vector<1x4x4xf32>
    %cst_5 = arith.constant dense<0.000000e+00> : vector<1xf32>
    %8 = vector.multi_reduction <add>, %7, %cst_5 [1, 2] : vector<1x4x4xf32> to vector<1xf32>
    %9 = vector.shape_cast %8 : vector<1xf32> to vector<1x1x1xf32>
    %10 = vector.extract %9[0, 0, 0] : f32 from vector<1x1x1xf32>
    %11 = vector.broadcast %10 : f32 to vector<1x1xf32>
    %12 = vector.shape_cast %11 : vector<1x1xf32> to vector<1x1x1xf32>
    %13 = vector.broadcast %12 : vector<1x1x1xf32> to vector<1x8x128xf32>
    %c0_6 = arith.constant 0 : index
    %c0_7 = arith.constant 0 : index
    %c0_8 = arith.constant 0 : index
    %14 = vector.load %arg4[%c0_6, %c0_7, %c0_8] : memref<1x8x128xf32, #tpu.memory_space<vmem>>, vector<1x8x128xf32>
    tpu.vector_store %arg4[%c0_6, %c0_7, %c0_8], %13 {strides = array<i32>} : memref<1x8x128xf32, #tpu.memory_space<vmem>>, vector<1x8x128xf32>,
    return
  }
  func.func @transform_0(%arg0: i32) -> (i32, i32) {
    %c0_i32 = arith.constant 0 : i32
    %c0_i32_0 = arith.constant 0 : i32
    return %arg0, %c0_i32 : i32, i32
  }
  func.func @transform_1(%arg0: i32) -> (i32, i32) {
    %c0_i32 = arith.constant 0 : i32
    %c0_i32_0 = arith.constant 0 : i32
    return %arg0, %c0_i32 : i32, i32
  }
  func.func @transform_2(%arg0: i32) -> (i32, i32) {
    %c0_i32 = arith.constant 0 : i32
    %c0_i32_0 = arith.constant 0 : i32
    %c0_i32_1 = arith.constant 0 : i32
    return %c0_i32, %c0_i32_0 : i32, i32
  }
  func.func @transform_3(%arg0: i32) -> (i32, i32, i32) {
    %c0_i32 = arith.constant 0 : i32
    %c0_i32_0 = arith.constant 0 : i32
    %c0_i32_1 = arith.constant 0 : i32
    return %arg0, %c0_i32, %c0_i32_0 : i32, i32, i32
  }
}

</mosaic_0001>

<bundles_post_ra>
// kernel: tpu_custom_call.1
= control target key start
LH: loop header
LB: loop body
LE: loop exit
PB: predicated region body
PF: predicated region fallthrough
CT: control target
= control target key end

     0   :  { %v247_v3 = vmov 0.0|0.0   ;;  %vm248_vm0 = vmmov 0   ;;  %v249_v6 = vmov 0.0   ;;  %s337_s0 = inlined_call_operand.vmem [shape: f32[4,128], index: 0, kind: input, shape index: {}]   ;;  %s338_s1 = inlined_call_operand.vmem [shape: f32[4,128], index: 1, kind: input, shape index: {}]   ;;  %s339_s2 = inlined_call_operand.vmem [shape: f32[128,4], index: 2, kind: input, shape index: {}]   ;;  %s340_s3 = inlined_call_operand.hbm [shape: f32[1,8,128], index: 3, kind: output, shape index: {}]  }
   0x1   :  { %v19_v0 = vld [vmem:[%s339_s2] sm:$0xff]  ;;  %v20_v1 = vld [vmem:[%s339_s2 + $0x8] sm:$0xff]  ;;  %v21_v2 = vld [vmem:[%s339_s2 + $0x10] sm:$0xff]  ;;  %191 = vmatprep.subr.bf16.mxu0 %v247_v3  ;;  %188 = vmatprep.mubr.msk.f32.mxu0 %vm248_vm0, %v249_v6 }
   0x2   :  { %v192_v4 = vpack.c.bf16 %v20_v1, %v19_v0  ;;  %v22_v5 = vld [vmem:[%s339_s2 + $0x18] sm:$0xff]  ;;  %v23_v8 = vld [vmem:[%s339_s2 + $0x20] sm:$0xff]  ;;  %v24_v9 = vld [vmem:[%s339_s2 + $0x28] sm:$0xff] }
   0x3   :  { %v195_v7 = vpack.c.bf16 %v22_v5, %v21_v2 }
   0x4   :  { %193 = vmatpush3.bf16.msra.mxu0 %v192_v4 }
   0x5   :  { %194 = vmatprep.subr.bf16.mxu0 %v247_v3 }
   0x6   :  { %8 = vsyncpa [#allocation3], 0  ;;  %v198_v10 = vpack.c.bf16 %v24_v9, %v23_v8  ;;  %v25_v11 = vld [vmem:[%s339_s2 + $0x30] sm:$0xff]  ;;  %v26_v12 = vld [vmem:[%s339_s2 + $0x38] sm:$0xff]  ;;  %vm112_vm2 = vcmask 27648  }
   0x7   :  { %v201_v13 = vpack.c.bf16 %v26_v12, %v25_v11  ;;  %v27_v14 = vld [vmem:[%s339_s2 + $0x40] sm:$0xff]  ;;  %v28_v15 = vld [vmem:[%s339_s2 + $0x48] sm:$0xff]  ;;  %v29_v17 = vld [vmem:[%s339_s2 + $0x50] sm:$0xff] }
   0x8   :  { %196 = vmatpush3.bf16.msra.mxu0 %v195_v7  ;;  %v204_v16 = vpack.c.bf16 %v28_v15, %v27_v14  ;;  %v30_v18 = vld [vmem:[%s339_s2 + $0x58] sm:$0xff]  ;;  %v31_v20 = vld [vmem:[%s339_s2 + $0x60] sm:$0xff]  ;;  %v32_v21 = vld [vmem:[%s339_s2 + $0x68] sm:$0xff] }
   0x9   :  { %197 = vmatprep.subr.bf16.mxu0 %v247_v3  ;;  %v207_v19 = vpack.c.bf16 %v30_v18, %v29_v17  ;;  %v210_v22 = vpack.c.bf16 %v32_v21, %v31_v20  ;;  %v15_v23 = vld [vmem:[%s337_s0] sm:$0xf]  ;;  %v33_v25 = vld [vmem:[%s339_s2 + $0x70] sm:$0xff]  ;;  %v34_v26 = vld [vmem:[%s339_s2 + $0x78] sm:$0xff]  ;;  %s250_s0 = smov [#allocation2]  }
   0xa   :  { %v16_v24 = vld [vmem:[%s338_s1] sm:$0xf]  ;;  %v213_v28 = vpack.c.bf16 %v34_v26, %v33_v25  ;;  %s131_s1 = sshll.u32 %s250_s0, 4  ;;  %s132_s1 = int_to_ptr.vmem [resolvable:$true] %s131_s1 }
   0xb   :  { %v17_v27 = vsub.f32 %v15_v23, %v16_v24  ;;  %s223_s21 = scalar_lea.vmem %s132_s1, 128  ;;  %p228_p1 = scmp.lt.s32.totalorder %s132_s1, %s132_s1 }
   0xc   :  { %199 = vmatpush3.bf16.msra.mxu0 %v198_v10  ;;  %p224_p0 = scmp.ne.s32.totalorder %s132_s1, %s223_s21  ;;  %p229_p2 = scmp.lt.s32.totalorder %s223_s21, %s223_s21 }
   0xd   :  { %200 = vmatprep.subr.bf16.mxu0 %v247_v3  ;;  %v18_v29 = vmul.f32 %v17_v27, %v17_v27 }
   0xe   :  { %p230_p3 = por %p229_p2, %p228_p1 }
  0x10   :  { %202 = vmatpush3.bf16.msra.mxu0 %v201_v13  ;;  %p231_p4 = pnand %p230_p3, %p224_p0 }
  0x11   :  { %203 = vmatprep.subr.bf16.mxu0 %v247_v3 }
  0x14   :  { %205 = vmatpush3.bf16.msra.mxu0 %v204_v16 }
  0x15   :  { %206 = vmatprep.subr.bf16.mxu0 %v247_v3 }
  0x18   :  { %208 = vmatpush3.bf16.msra.mxu0 %v207_v19 }
  0x19   :  { %209 = vmatprep.subr.bf16.mxu0 %v247_v3 }
  0x1c   :  { %211 = vmatpush3.bf16.msra.mxu0 %v210_v22 }
  0x1d   :  { %212 = vmatprep.subr.bf16.mxu0 %v247_v3 }
  0x20   :  { %214 = vmatpush3.bf16.msra.mxu0 %v213_v28 }
  0x23   :  { %189 = vmatmul.mubr.f32.vlgmr.msra.gmra.mrb[0].mxu0 %v18_v29 }
  0xf6   :  { %v101_v30 = vpop.f32.mrb[0].mxu0 }
  0xf7   :  { %221 = vrsqrt.f32 %v101_v30  ;;  %v190_v31 = vpop.f32.mrb[1].mxu0  ;;  %vm107_vm1 = vcmp.eq.f32.partialorder %v101_v30, inf  ;;  %v110_v34 = vand.u32 2147483648, %v101_v30  ;;  %vm109_vm3 = vcmp.eq.f32.partialorder %v101_v30, 0.0 }
 0x101   :  { %v222_v32 = vpop.eup %221 }
 0x102   :  { %v106_v33 = vmul.f32 %v222_v32, %v101_v30 }
 0x104   :  { %v108_v35 = vsel %vm107_vm1, %v101_v30, %v106_v33 }
 0x105   :  { %v111_v36 = vsel %vm109_vm3, %v110_v34, %v108_v35 }
 0x106   :  { %v113_v37 = vsel %vm112_vm2, %v111_v36, 0.0 }
 0x107   :  { %114 = vadd.xlane.f32.xlu0 %v113_v37 }
 0x194   :  { %v115_v38 = vpop.xlane.xlu0 %114 }
 0x195   :  { %v116_v39 = vrot.slane %v115_v38, 4 }
 0x197   :  { %v117_v40 = vadd.f32 %v116_v39, %v115_v38 }
 0x199   :  { %v118_v41 = vrot.slane %v117_v40, 2 }
 0x19b   :  { %v119_v42 = vadd.f32 %v118_v41, %v117_v40 }
 0x19d   :  { %v120_v43 = vrot.slane %v119_v42, 1 }
 0x19f   :  { %v121_v44 = vadd.f32 %v120_v43, %v119_v42 }
 0x1a1   :  { %215 = vpush %v121_v44 }
 0x1d2   :  { %s216_s2 = spop %215 }
 0x1d3   :  { %v123_v45 = vstv %s216_s2 }
 0x1d4   :  { %124 = vst [vmem:[#allocation2] sm:$0xff] %v123_v45 }
 0x1d5   :  { %234 = shalt.err (!%p231_p4)
}
 0x1d6   :  { %s235_s24 = scalar_lea.hbm %s340_s3, 128 }
 0x1d7   :  { %p236_p5 = scmp.ne.s32.totalorder %s340_s3, %s235_s24  ;;  %p239_p6 = scmp.lt.u32.totalorder %s235_s24, %s340_s3 }
 0x1d9   :  { %p241_p7 = pnand %p239_p6, %p236_p5 }
 0x1db   :  { %244 = shalt.err (!%p241_p7)
}
 0x1dc   :  { %134 = dma.vmem_to_hbm [thread:$0]  %s132_s1, 128, %s340_s3, [#allocation3]  }
 0x1dd   :  { %245 = dma.done.wait [#allocation3], 128  }
 0x1de   :  { %246 = vsyncadd [#allocation3], 4294967168 }
 0x1df   :  { %138 = vsyncpa [#allocation3], 1 }

</bundles_post_ra>
